<compile_context>
chip_gen: v7x
topology: tpu7x:2x2x1
jax: 0.10.0
libtpu: 0.0.40
codegen_flags: <defaults>
</compile_context>

<pallas_src>
import jax
import jax.numpy as jnp
from jax.experimental import pallas as pl
from jax.experimental.pallas import tpu as pltpu


def _awl_kernel(in_ref, out_ref):
    # in_ref : (3, num) f32  -- rows: [loss, effi, params]
    # out_ref: (2, num) f32  -- rows: [new_loss, new_effi]
    l = in_ref[pl.ds(0, 1), :]          # (1, num)
    e = in_ref[pl.ds(1, 1), :]          # (1, num)
    p = in_ref[pl.ds(2, 1), :]          # (1, num)

    p2 = p * p
    inv = pl.reciprocal(2.0 * p2, approx=False)   # == 0.5 / params^2 (exact)

    out_ref[pl.ds(0, 1), :] = inv * l * e + jnp.log(1.0 + p2)
    out_ref[pl.ds(1, 1), :] = e * inv


def automatic_weighted_loss(loss_vec, effi_vec, params):
    """loss_vec, effi_vec, params: 1-D arrays of length num. Returns (new_loss, new_effi)."""
    num = loss_vec.shape[0]

    # One stacked (3, num) input -> one inbound DMA; whole-array block, no padding.
    stacked = jnp.stack(
        [
            loss_vec.astype(jnp.float32),
            effi_vec.astype(jnp.float32),
            params.astype(jnp.float32),
        ],
        axis=0,
    )

    vmem_spec = pl.BlockSpec(memory_space=pltpu.MemorySpace.VMEM)

    out = pl.pallas_call(
        _awl_kernel,
        in_specs=[vmem_spec],
        out_specs=vmem_spec,
        out_shape=jax.ShapeDtypeStruct((2, num), jnp.float32),
    )(stacked)

    # Note: in torch the 0.5/p^2 scale applied to effi is detached; this kernel is
    # forward-only so the numerical result is identical.
    return out[0], out[1]


def _reference(loss_vec, effi_vec, params):
    p2 = params.astype(jnp.float32) ** 2
    new_loss = 0.5 / p2 * loss_vec * effi_vec + jnp.log(1.0 + p2)
    new_effi = effi_vec * (0.5 / p2)
    return new_loss, new_effi


if __name__ == "__main__":
    key = jax.random.PRNGKey(0)
    num = 2  # matches AutomaticWeightedLoss(num=2)

    # Deterministic parameter init: torch.ones(num)
    params = jnp.ones((num,), dtype=jnp.float32)

    # Synthetic multi-task losses: means of small random feature maps [2,4,16,16]
    k1, k2, k3 = jax.random.split(key, 3)
    feat1 = jax.random.normal(k1, (2, 4, 16, 16), dtype=jnp.float32)
    feat2 = jax.random.normal(k2, (2, 4, 16, 16), dtype=jnp.float32)
    loss_vec = jnp.stack([jnp.mean(feat1 ** 2), jnp.mean(feat2 ** 2)])
    effi_vec = jax.random.uniform(k3, (num,), dtype=jnp.float32, minval=0.5, maxval=1.5)

    out_loss, out_effi = automatic_weighted_loss(loss_vec, effi_vec, params)
    out_loss, out_effi = jax.block_until_ready((out_loss, out_effi))

    ref_loss, ref_effi = _reference(loss_vec, effi_vec, params)
    assert jnp.allclose(out_loss, ref_loss, rtol=1e-5, atol=1e-6), (out_loss, ref_loss)
    assert jnp.allclose(out_effi, ref_effi, rtol=1e-5, atol=1e-6), (out_effi, ref_effi)

    print("KERNEL_OK")
</pallas_src>

<mosaic_0001>
module attributes {stable_mosaic.version = 11 : i64} {
  func.func @_awl_kernel(%arg0: memref<3x2xf32, #tpu.memory_space<vmem>>, %arg1: memref<2x2xf32, #tpu.memory_space<vmem>>) attributes {dimension_semantics = [], scalar_prefetch = 0 : i64, scratch_operands = 0 : i64, tpu.core_type = #tpu.core_type<tc>} {
    %c0 = arith.constant 0 : index
    %c0_0 = arith.constant 0 : index
    %0 = vector.load %arg0[%c0, %c0_0] : memref<3x2xf32, #tpu.memory_space<vmem>>, vector<1x2xf32>
    %c1 = arith.constant 1 : index
    %c0_1 = arith.constant 0 : index
    %1 = vector.load %arg0[%c1, %c0_1] : memref<3x2xf32, #tpu.memory_space<vmem>>, vector<1x2xf32>
    %c2 = arith.constant 2 : index
    %c0_2 = arith.constant 0 : index
    %2 = vector.load %arg0[%c2, %c0_2] : memref<3x2xf32, #tpu.memory_space<vmem>>, vector<1x2xf32>
    %3 = arith.mulf %2, %2 : vector<1x2xf32>
    %cst = arith.constant 2.000000e+00 : f32
    %4 = vector.broadcast %cst : f32 to vector<1x2xf32>
    %5 = arith.mulf %4, %3 : vector<1x2xf32>
    %6 = tpu.reciprocal %5 : vector<1x2xf32> -> vector<1x2xf32>
    %7 = arith.mulf %6, %0 : vector<1x2xf32>
    %8 = arith.mulf %7, %1 : vector<1x2xf32>
    %cst_3 = arith.constant 1.000000e+00 : f32
    %9 = vector.broadcast %cst_3 : f32 to vector<1x2xf32>
    %10 = arith.addf %9, %3 : vector<1x2xf32>
    %11 = math.log %10 : vector<1x2xf32>
    %12 = arith.addf %8, %11 : vector<1x2xf32>
    %c0_4 = arith.constant 0 : index
    %c0_5 = arith.constant 0 : index
    %13 = vector.load %arg1[%c0_4, %c0_5] : memref<2x2xf32, #tpu.memory_space<vmem>>, vector<1x2xf32>
    tpu.vector_store %arg1[%c0_4, %c0_5], %12 {strides = array<i32>} : memref<2x2xf32, #tpu.memory_space<vmem>>, vector<1x2xf32>,
    %14 = arith.mulf %1, %6 : vector<1x2xf32>
    %c1_6 = arith.constant 1 : index
    %c0_7 = arith.constant 0 : index
    %15 = vector.load %arg1[%c1_6, %c0_7] : memref<2x2xf32, #tpu.memory_space<vmem>>, vector<1x2xf32>
    tpu.vector_store %arg1[%c1_6, %c0_7], %14 {strides = array<i32>} : memref<2x2xf32, #tpu.memory_space<vmem>>, vector<1x2xf32>,
    return
  }
}

</mosaic_0001>

<bundles_post_ra>
// kernel: tpu_custom_call.1
= control target key start
LH: loop header
LB: loop body
LE: loop exit
PB: predicated region body
PF: predicated region fallthrough
CT: control target
= control target key end

     0   :  { %s100_s0 = inlined_call_operand.vmem [shape: f32[3,2], index: 0, kind: input, shape index: {}]   ;;  %s101_s1 = inlined_call_operand.hbm [shape: f32[2,2], index: 1, kind: output, shape index: {}]  }
   0x1   :  { %v11_v0 = vld [vmem:[%s100_s0 + $0x2] sm:$0x1] }
   0x2   :  { %v12_v1 = vmul.f32 %v11_v0, %v11_v0 }
   0x3   :  { %6 = vsyncpa [#allocation3], 0  ;;  %v9_v4 = vld [vmem:[%s100_s0] sm:$0x1]  ;;  %v10_v6 = vld [vmem:[%s100_s0 + $0x1] sm:$0x1] }
   0x4   :  { %v13_v2 = vmul.f32 2.0, %v12_v1  ;;  %v17_v3 = vadd.f32 1.0, %v12_v1  ;;  %vm21_vm0 = vcmask 8192   ;;  %s68_s12 = smov [#allocation2]  }
   0x5   :  { %s31_s13 = sshll.u32 %s68_s12, 4  ;;  %s32_s13 = int_to_ptr.vmem [resolvable:$true] %s31_s13 }
   0x6   :  { %40 = vrcp.f32 %v13_v2  ;;  %s44_s14 = scalar_lea.vmem %s32_s13, 32  ;;  %p49_p1 = scmp.lt.s32.totalorder %s32_s13, %s32_s13 }
   0x7   :  { %42 = vlog2.f32 %v17_v3  ;;  %p45_p0 = scmp.ne.s32.totalorder %s32_s13, %s44_s14  ;;  %p50_p2 = scmp.lt.s32.totalorder %s44_s14, %s44_s14 }
   0x9   :  { %p51_p3 = por %p50_p2, %p49_p1 }
   0xb   :  { %p52_p4 = pnand %p51_p3, %p45_p0 }
  0x10   :  { %v41_v5 = vpop.eup %40 }
  0x11   :  { %v43_v7 = vpop.eup %42  ;;  %v15_v8 = vmul.f32 %v41_v5, %v9_v4  ;;  %v23_v9 = vmul.f32 %v41_v5, %v10_v6 }
  0x12   :  { %v19_v10 = vmul.f32 0.6931472, %v43_v7 }
  0x13   :  { %v16_v11 = vmul.f32 %v15_v8, %v10_v6  ;;  %24 = vst.msk [vmem:[#allocation2 + $0x1] sm:$0x1] %vm21_vm0, %v23_v9 }
  0x15   :  { %v20_v12 = vadd.f32 %v19_v10, %v16_v11 }
  0x17   :  { %22 = vst.msk [vmem:[#allocation2] sm:$0x1] %vm21_vm0, %v20_v12 }
  0x18   :  { %55 = shalt.err (!%p52_p4)
}
  0x19   :  { %s56_s16 = scalar_lea.hbm %s101_s1, 32 }
  0x1a   :  { %p57_p5 = scmp.ne.s32.totalorder %s101_s1, %s56_s16  ;;  %p60_p6 = scmp.lt.u32.totalorder %s56_s16, %s101_s1 }
  0x1c   :  { %p62_p7 = pnand %p60_p6, %p57_p5 }
  0x1e   :  { %65 = shalt.err (!%p62_p7)
}
  0x1f   :  { %34 = dma.vmem_to_hbm [thread:$0]  %s32_s13, 32, %s101_s1, [#allocation3]  }
  0x20   :  { %66 = dma.done.wait [#allocation3], 32  }
  0x21   :  { %67 = vsyncadd [#allocation3], 4294967264 }
  0x22   :  { %38 = vsyncpa [#allocation3], 1 }

</bundles_post_ra>
